<compile_context>
chip_gen: v5e
topology: v5e:2x2
jax: 0.10.0
libtpu: 0.0.40
codegen_flags: <defaults>
</compile_context>

<pallas_src>
import re

import jax
import jax.numpy as jnp
from jax import lax
from jax.experimental import pallas as pl
from jax.experimental.pallas import tpu as pltpu

LEAKY_SLOPE = 0.2
_LANE = 128
_PATCH_BYTES = 2 * 1024 * 1024     # target im2col patch size per chunk


def _round_up(x, m):
    return ((x + m - 1) // m) * m


def _tpu_generation():
    try:
        kind = jax.devices()[0].device_kind.lower()
    except Exception:
        return 6
    m = re.search(r"v(\d+)", kind)
    return int(m.group(1)) if m else 6


def _vmem_limit_bytes(gen):
    cap = 64 * 1024 * 1024 if gen >= 7 else 128 * 1024 * 1024
    try:
        info = pltpu.get_tpu_info()
        cap = int(getattr(info, "vmem_capacity_bytes", cap)) or cap
    except Exception:
        pass
    return max(32 * 1024 * 1024, (cap * 3) // 4)


_GEN = _tpu_generation()
_VMEM_LIMIT = _vmem_limit_bytes(_GEN)
# v5e: 128x128 MXUs + single vst slot -> smaller dot tiles; v6e/v7x: 256-wide MXU.
_CT_PREF = 128 if _GEN <= 5 else 256
_LT_BASE = 256 if _GEN <= 5 else 512


def _pick_lt(loutp, kcg, itemsize):
    """Length-chunk size: multiple of 128 dividing LoutP, patch <= ~2 MiB."""
    cap = (_PATCH_BYTES // max(kcg * itemsize, 1)) // _LANE * _LANE
    cap = max(_LT_BASE, cap)
    cap = min(cap, 2048, loutp)
    cap = max(cap, _LANE)
    lt = cap
    while loutp % lt:
        lt -= _LANE
    return lt


# --------------------------------------------------------------------------
# Pallas conv1d (stride, groups, optional bias, optional LeakyReLU)
# --------------------------------------------------------------------------
def conv1d_layer(x, w, b, *, stride, pad, groups, reflect, leaky,
                 out_dtype=None):
    """Grouped/strided Conv1d + bias + optional LeakyReLU, NCL layout.

    x: (B, Cin, Lin); w: (Cout, Cin//groups, K) or per-example (B, Cout, Cin//groups, K);
    b: (Cout,) float32 or None.
    """
    B, Cin, Lin = x.shape
    if w.ndim == 4:
        Bw, Cout, Cg_in, K = w.shape
        assert Bw == B
    else:
        Cout, Cg_in, K = w.shape
        Bw = 1
    assert Cin == Cg_in * groups and Cout % groups == 0
    Cg_out = Cout // groups
    out_dtype = x.dtype if out_dtype is None else out_dtype

    Lout = (Lin + 2 * pad - K) // stride + 1
    LoutP = _round_up(Lout, _LANE)
    qmax = (K - 1) // stride
    LqP = LoutP + qmax

    # bf16 feeds the MXU at full rate; f32 only when the per-group input channel
    # count is odd (the tiny first layer, Cg_in == 1) so bf16 sublane packing is clean.
    cdtype = jnp.float32 if (Cg_in % 2) else jnp.bfloat16
    itemsize = jnp.dtype(cdtype).itemsize
    KCg = K * Cg_in

    LT = _pick_lt(LoutP, KCg, itemsize)
    n_chunks = LoutP // LT

    # Cout tiles are looped inside the kernel so the patch is shared across them.
    ct = _CT_PREF if (Cg_out > _CT_PREF and Cg_out % _CT_PREF == 0) else Cg_out
    CT = Cg_out // ct

    # Several small groups per grid step to amortize per-step overhead.
    gb_target = max(1, min(8, 128 // max(Cg_out, 1)))
    GB = 1
    for d in range(gb_target, 0, -1):
        if groups % d == 0:
            GB = d
            break
    nGB = groups // GB

    # ---- glue: pad (+ stride-phase split only needed when stride > 1) ------
    xb = x.astype(cdtype)
    mode = "reflect" if reflect else "constant"
    xp = jnp.pad(xb, ((0, 0), (0, 0), (pad, pad)), mode=mode)
    tgt = stride * LqP
    Lp = xp.shape[-1]
    if Lp < tgt:
        xp = jnp.pad(xp, ((0, 0), (0, 0), (0, tgt - Lp)))
    elif Lp > tgt:
        xp = xp[:, :, :tgt]
    # xs[b, g, r, ci, q] == xp[b, g*Cg_in + ci, stride*q + r]
    # For stride == 1 this transpose is a size-1 axis move (free); for stride > 1 it
    # is a bf16 phase-split relayout fused with the pad.
    # TODO(synk): an in-kernel strided lane load (pl.ds(..., stride=stride)) would
    # remove the stride>1 relayout, but its lane-dim lowering is not guaranteed.
    xs = xp.reshape(B, groups, Cg_in, LqP, stride).transpose(0, 1, 4, 2, 3)

    # ---- glue: weight -> (Bw, G, Cg_out, K*Cg_in), row index = k*Cg_in + ci -
    wt = (w.reshape(Bw, groups, Cg_out, Cg_in, K)
           .transpose(0, 1, 2, 4, 3)
           .reshape(Bw, groups, Cg_out, KCg)
           .astype(cdtype))
    bias = b if b is not None else jnp.zeros((Cout,), jnp.float32)
    bias = bias.astype(jnp.float32).reshape(groups, Cg_out, 1)

    # ---- kernel ------------------------------------------------------------
    def kernel(x_ref, w_ref, b_ref, o_ref, patch_ref):
        for gi in range(GB):
            for c in range(n_chunks):
                lo = c * LT
                # im2col: pack all K taps into one deep contraction; built once per
                # (group, chunk), reused across Cout tiles.
                for k in range(K):
                    r, q = k % stride, k // stride
                    patch_ref[k * Cg_in:(k + 1) * Cg_in, :] = (
                        x_ref[0, gi, r, :, lo + q:lo + q + LT])
                for t in range(CT):
                    co = t * ct
                    acc = jnp.dot(w_ref[0, gi, co:co + ct, :], patch_ref[...],
                                  preferred_element_type=jnp.float32)
                    acc = acc + b_ref[gi, co:co + ct, :]
                    if leaky:
                        acc = jnp.where(acc >= 0.0, acc, LEAKY_SLOPE * acc)
                    o_ref[0, gi, co:co + ct, lo:lo + LT] = acc.astype(out_dtype)

    if Bw > 1:
        w_idx = lambda g, b_: (b_, g, 0, 0)
    else:
        w_idx = lambda g, b_: (0, g, 0, 0)

    y = pl.pallas_call(
        kernel,
        out_shape=jax.ShapeDtypeStruct((B, groups, Cg_out, LoutP), out_dtype),
        grid=(nGB, B),                      # batch innermost: weight block stays resident
        in_specs=[
            pl.BlockSpec((1, GB, stride, Cg_in, LqP),
                         lambda g, b_: (b_, g, 0, 0, 0)),
            pl.BlockSpec((1, GB, Cg_out, KCg), w_idx),
            pl.BlockSpec((GB, Cg_out, 1), lambda g, b_: (g, 0, 0)),
        ],
        out_specs=pl.BlockSpec((1, GB, Cg_out, LoutP),
                               lambda g, b_: (b_, g, 0, 0)),
        scratch_shapes=[pltpu.VMEM((KCg, LT), cdtype)],
        compiler_params=pltpu.CompilerParams(
            dimension_semantics=("parallel", "parallel"),
            vmem_limit_bytes=_VMEM_LIMIT),
    )(xs, wt, bias)

    y = y.reshape(B, Cout, LoutP)
    return y if LoutP == Lout else y[:, :, :Lout]


# --------------------------------------------------------------------------
# Pallas AvgPool1d(kernel=4, stride=2, padding=1, count_include_pad=False)
# --------------------------------------------------------------------------
def avgpool1d(x):
    B, C, L = x.shape
    Lout = (L + 2 - 4) // 2 + 1
    LoutP = _round_up(Lout, _LANE)
    LqP = LoutP + 1

    xp = jnp.pad(x, ((0, 0), (0, 0), (1, 1)))
    tgt = 2 * LqP
    Lp = xp.shape[-1]
    if Lp < tgt:
        xp = jnp.pad(xp, ((0, 0), (0, 0), (0, tgt - Lp)))
    elif Lp > tgt:
        xp = xp[:, :, :tgt]
    xs = xp.reshape(B, C, LqP, 2).transpose(0, 3, 1, 2)   # (B, 2, C, LqP)

    # count_include_pad=False: divide by the number of non-pad taps in each window
    # (handles the odd-length case where the last window touches no right pad).
    idx = jnp.arange(LoutP)
    cnt = jnp.minimum(2 * idx + 3, L) - jnp.maximum(2 * idx, 1) + 1
    cnt = jnp.maximum(cnt, 1)
    scale = jnp.where(idx < Lout, 1.0 / cnt.astype(jnp.float32), 0.0)
    scale = scale.astype(x.dtype).reshape(1, LoutP)

    def kernel(x_ref, s_ref, o_ref):
        acc = (x_ref[0, 0, :, pl.ds(0, LoutP)] + x_ref[0, 1, :, pl.ds(0, LoutP)]
               + x_ref[0, 0, :, pl.ds(1, LoutP)] + x_ref[0, 1, :, pl.ds(1, LoutP)])
        o_ref[0] = acc * s_ref[...]

    y = pl.pallas_call(
        kernel,
        out_shape=jax.ShapeDtypeStruct((B, C, LoutP), x.dtype),
        grid=(B,),
        in_specs=[
            pl.BlockSpec((1, 2, C, LqP), lambda b_: (b_, 0, 0, 0)),
            pl.BlockSpec((1, LoutP), lambda b_: (0, 0)),
        ],
        out_specs=pl.BlockSpec((1, C, LoutP), lambda b_: (b_, 0, 0)),
        compiler_params=pltpu.CompilerParams(
            dimension_semantics=("parallel",),
            vmem_limit_bytes=_VMEM_LIMIT),
    )(xs, scale)
    return y[:, :, :Lout]


# --------------------------------------------------------------------------
# Parameter construction (deterministic, PyTorch-like uniform(+-1/sqrt(fan_in)))
# --------------------------------------------------------------------------
def init_disc_params(key, num_classes, num_layers, ncb, mult, ds):
    keys = jax.random.split(key, 2 * (num_layers + 2) + 1)
    ki = 0

    def uinit(k, shape, fan_in):
        bound = 1.0 / (fan_in ** 0.5)
        return jax.random.uniform(k, shape, jnp.float32, -bound, bound)

    layers = []
    layers.append(dict(w=uinit(keys[ki], (ncb, 1, 15), 15),
                       b=uinit(keys[ki + 1], (ncb,), 15),
                       stride=1, pad=7, groups=1, reflect=True))
    ki += 2
    nf = ncb
    for _ in range(num_layers):
        nf_prev = nf
        nf = min(nf * mult, 1024)
        K = ds * 10 + 1
        groups = nf_prev // mult
        cg_in = nf_prev // groups
        fan = cg_in * K
        layers.append(dict(w=uinit(keys[ki], (nf, cg_in, K), fan),
                           b=uinit(keys[ki + 1], (nf,), fan),
                           stride=ds, pad=ds * 5, groups=groups, reflect=False))
        ki += 2
    fan = nf * 5
    layers.append(dict(w=uinit(keys[ki], (nf, nf, 5), fan),
                       b=uinit(keys[ki + 1], (nf,), fan),
                       stride=1, pad=2, groups=1, reflect=False))
    ki += 2
    out_w = uinit(keys[ki], (num_classes, nf, 3), nf * 3)
    return dict(layers=layers, out_w=out_w)


# --------------------------------------------------------------------------
# Forward passes (Pallas-backed)
# --------------------------------------------------------------------------
def discriminator_forward(params, x, label):
    features = []
    h = x
    for lp in params["layers"]:
        h = conv1d_layer(h, lp["w"], lp["b"], stride=lp["stride"], pad=lp["pad"],
                         groups=lp["groups"], reflect=lp["reflect"], leaky=True,
                         out_dtype=jnp.bfloat16)
        features.append(h)
    # Only the labeled class row of the output conv is ever used -> gather the
    # per-example weight row first and run the last conv with Cout == 1.
    w_sel = params["out_w"][label][:, None, :, :]        # (B, 1, nf, 3)
    out = conv1d_layer(h, w_sel, None, stride=1, pad=1, groups=1, reflect=False,
                       leaky=False, out_dtype=jnp.float32)
    return out, features


def multiscale_forward(all_params, x, label):
    outs, feats = [], []
    for i, p in enumerate(all_params):
        o, f = discriminator_forward(p, x, label)
        outs.append(o)
        feats.append(f)
        if i < len(all_params) - 1:
            x = avgpool1d(x)
    return outs, feats


# --------------------------------------------------------------------------
# Pure-JAX reference (same dtype path as the kernels; PyTorch-faithful gather)
# --------------------------------------------------------------------------
def conv1d_ref(x, w, b, stride, pad, groups, reflect, leaky, out_dtype):
    cg_in = w.shape[-2]
    cdtype = jnp.float32 if (cg_in % 2) else jnp.bfloat16
    mode = "reflect" if reflect else "constant"
    xp = jnp.pad(x.astype(cdtype), ((0, 0), (0, 0), (pad, pad)), mode=mode)
    y = lax.conv_general_dilated(
        xp, w.astype(cdtype), (stride,), "VALID",
        dimension_numbers=("NCH", "OIH", "NCH"),
        feature_group_count=groups,
        preferred_element_type=jnp.float32)
    if b is not None:
        y = y + b.reshape(1, -1, 1)
    if leaky:
        y = jnp.where(y >= 0, y, LEAKY_SLOPE * y)
    return y.astype(out_dtype)


def avgpool1d_ref(x):
    B, C, L = x.shape
    Lout = (L + 2 - 4) // 2 + 1
    xp = jnp.pad(x, ((0, 0), (0, 0), (1, 1)))
    s = jnp.zeros((B, C, Lout), x.dtype)
    for k in range(4):
        s = s + xp[:, :, k:k + 2 * Lout:2]
    idx = jnp.arange(Lout)
    cnt = jnp.minimum(2 * idx + 3, L) - jnp.maximum(2 * idx, 1) + 1
    return s / cnt.astype(jnp.float32)


def multiscale_ref(all_params, x, label):
    outs, feats = [], []
    for i, p in enumerate(all_params):
        h = x
        f = []
        for lp in p["layers"]:
            h = conv1d_ref(h, lp["w"], lp["b"], lp["stride"], lp["pad"],
                           lp["groups"], lp["reflect"], True, jnp.bfloat16)
            f.append(h)
        y = conv1d_ref(h, p["out_w"], None, 1, 1, 1, False, False, jnp.float32)
        Bn = y.shape[0]
        idx = jnp.broadcast_to(label.reshape(Bn, 1, 1), (Bn, 1, y.shape[2]))
        outs.append(jnp.take_along_axis(y, idx, axis=1))
        feats.append(f)
        if i < len(all_params) - 1:
            x = avgpool1d_ref(x)
    return outs, feats


# --------------------------------------------------------------------------
if __name__ == "__main__":
    key = jax.random.PRNGKey(0)
    B, L = 2, 256
    num_disc, num_classes, num_layers = 2, 3, 2
    num_channels_base, num_channel_mult, downsampling_factor = 4, 4, 4

    k_x, k_lbl, k_p, k_t = jax.random.split(key, 4)
    x = jax.random.normal(k_x, (B, 1, L), jnp.float32)
    label_tgt = jax.random.randint(k_lbl, (B,), 0, num_classes)

    pkeys = jax.random.split(k_p, num_disc)
    params = [init_disc_params(pkeys[i], num_classes, num_layers,
                               num_channels_base, num_channel_mult,
                               downsampling_factor)
              for i in range(num_disc)]

    outs, feats = multiscale_forward(params, x, label_tgt)
    jax.block_until_ready((outs, feats))

    # correctness vs. a pure-JAX reference (same bf16/f32 dtype path, PyTorch-style
    # full output conv + gather -- validates the label-select optimization)
    outs_ref, feats_ref = multiscale_ref(params, x, label_tgt)
    for o, orf in zip(outs, outs_ref):
        assert o.shape == orf.shape
        assert jnp.allclose(o.astype(jnp.float32), orf.astype(jnp.float32),
                            rtol=2e-2, atol=2e-2)
    for fl, frl in zip(feats, feats_ref):
        for f, fr in zip(fl, frl):
            assert f.shape == fr.shape
            assert jnp.allclose(f.astype(jnp.float32), fr.astype(jnp.float32),
                                rtol=2e-2, atol=2e-2)

    # also exercise the in-kernel Cout tiling (Cg_out > tile) + deep contraction path
    kw2, kb2, kx2 = jax.random.split(k_t, 3)
    xw = jax.random.normal(kx2, (2, 256, 128), jnp.float32)
    ww = jax.random.normal(kw2, (512, 256, 3), jnp.float32) * 0.05
    bw = jax.random.normal(kb2, (512,), jnp.float32) * 0.05
    yk = conv1d_layer(xw, ww, bw, stride=1, pad=1, groups=1,
                      reflect=False, leaky=True, out_dtype=jnp.float32)
    yr = conv1d_ref(xw, ww, bw, 1, 1, 1, False, True, jnp.float32)
    jax.block_until_ready(yk)
    assert yk.shape == yr.shape
    assert jnp.allclose(yk, yr, rtol=2e-2, atol=2e-2)

    print("KERNEL_OK")
</pallas_src>

<mosaic_0001>
module attributes {stable_mosaic.version = 11 : i64} {
  func.func @kernel(%arg0: i32, %arg1: i32, %arg2: memref<1x1x1x1x270xf32, #tpu.memory_space<vmem>>, %arg3: memref<1x1x4x15xf32, #tpu.memory_space<vmem>>, %arg4: memref<1x4x1xf32, #tpu.memory_space<vmem>>, %arg5: memref<1x1x4x256xbf16, #tpu.memory_space<vmem>>, %arg6: memref<15x256xf32, #tpu.memory_space<vmem>>) attributes {dimension_semantics = [#tpu.dimension_semantics<parallel>, #tpu.dimension_semantics<parallel>], iteration_bounds = array<i64: 1, 2>, scalar_prefetch = 0 : i64, scratch_operands = 1 : i64, tpu.core_type = #tpu.core_type<tc>, window_params = [{transform_indices = @transform_0, window_bounds = array<i64: 1, 1, 1, 1, 270>}, {transform_indices = @transform_1, window_bounds = array<i64: 1, 1, 4, 15>}, {transform_indices = @transform_2, window_bounds = array<i64: 1, 4, 1>}, {transform_indices = @transform_3, window_bounds = array<i64: 1, 1, 4, 256>}]} {
    %c0 = arith.constant 0 : index
    %c0_0 = arith.constant 0 : index
    %c0_1 = arith.constant 0 : index
    %c0_2 = arith.constant 0 : index
    %c0_3 = arith.constant 0 : index
    %0 = vector.load %arg2[%c0, %c0_0, %c0_1, %c0_2, %c0_3] : memref<1x1x1x1x270xf32, #tpu.memory_space<vmem>>, vector<1x1x1x1x256xf32>
    %1 = vector.shape_cast %0 : vector<1x1x1x1x256xf32> to vector<1x256xf32>
    %c0_4 = arith.constant 0 : index
    %c0_5 = arith.constant 0 : index
    %2 = vector.load %arg6[%c0_4, %c0_5] : memref<15x256xf32, #tpu.memory_space<vmem>>, vector<1x256xf32>
    tpu.vector_store %arg6[%c0_4, %c0_5], %1 {strides = array<i32>} : memref<15x256xf32, #tpu.memory_space<vmem>>, vector<1x256xf32>,
    %c0_6 = arith.constant 0 : index
    %c0_7 = arith.constant 0 : index
    %c0_8 = arith.constant 0 : index
    %c0_9 = arith.constant 0 : index
    %c1 = arith.constant 1 : index
    %3 = vector.load %arg2[%c0_6, %c0_7, %c0_8, %c0_9, %c1] : memref<1x1x1x1x270xf32, #tpu.memory_space<vmem>>, vector<1x1x1x1x256xf32>
    %4 = vector.shape_cast %3 : vector<1x1x1x1x256xf32> to vector<1x256xf32>
    %c1_10 = arith.constant 1 : index
    %c0_11 = arith.constant 0 : index
    %5 = vector.load %arg6[%c1_10, %c0_11] : memref<15x256xf32, #tpu.memory_space<vmem>>, vector<1x256xf32>
    tpu.vector_store %arg6[%c1_10, %c0_11], %4 {strides = array<i32>} : memref<15x256xf32, #tpu.memory_space<vmem>>, vector<1x256xf32>,
    %c0_12 = arith.constant 0 : index
    %c0_13 = arith.constant 0 : index
    %c0_14 = arith.constant 0 : index
    %c0_15 = arith.constant 0 : index
    %c2 = arith.constant 2 : index
    %6 = vector.load %arg2[%c0_12, %c0_13, %c0_14, %c0_15, %c2] : memref<1x1x1x1x270xf32, #tpu.memory_space<vmem>>, vector<1x1x1x1x256xf32>
    %7 = vector.shape_cast %6 : vector<1x1x1x1x256xf32> to vector<1x256xf32>
    %c2_16 = arith.constant 2 : index
    %c0_17 = arith.constant 0 : index
    %8 = vector.load %arg6[%c2_16, %c0_17] : memref<15x256xf32, #tpu.memory_space<vmem>>, vector<1x256xf32>
    tpu.vector_store %arg6[%c2_16, %c0_17], %7 {strides = array<i32>} : memref<15x256xf32, #tpu.memory_space<vmem>>, vector<1x256xf32>,
    %c0_18 = arith.constant 0 : index
    %c0_19 = arith.constant 0 : index
    %c0_20 = arith.constant 0 : index
    %c0_21 = arith.constant 0 : index
    %c3 = arith.constant 3 : index
    %9 = vector.load %arg2[%c0_18, %c0_19, %c0_20, %c0_21, %c3] : memref<1x1x1x1x270xf32, #tpu.memory_space<vmem>>, vector<1x1x1x1x256xf32>
    %10 = vector.shape_cast %9 : vector<1x1x1x1x256xf32> to vector<1x256xf32>
    %c3_22 = arith.constant 3 : index
    %c0_23 = arith.constant 0 : index
    %11 = vector.load %arg6[%c3_22, %c0_23] : memref<15x256xf32, #tpu.memory_space<vmem>>, vector<1x256xf32>
    tpu.vector_store %arg6[%c3_22, %c0_23], %10 {strides = array<i32>} : memref<15x256xf32, #tpu.memory_space<vmem>>, vector<1x256xf32>,
    %c0_24 = arith.constant 0 : index
    %c0_25 = arith.constant 0 : index
    %c0_26 = arith.constant 0 : index
    %c0_27 = arith.constant 0 : index
    %c4 = arith.constant 4 : index
    %12 = vector.load %arg2[%c0_24, %c0_25, %c0_26, %c0_27, %c4] : memref<1x1x1x1x270xf32, #tpu.memory_space<vmem>>, vector<1x1x1x1x256xf32>
    %13 = vector.shape_cast %12 : vector<1x1x1x1x256xf32> to vector<1x256xf32>
    %c4_28 = arith.constant 4 : index
    %c0_29 = arith.constant 0 : index
    %14 = vector.load %arg6[%c4_28, %c0_29] : memref<15x256xf32, #tpu.memory_space<vmem>>, vector<1x256xf32>
    tpu.vector_store %arg6[%c4_28, %c0_29], %13 {strides = array<i32>} : memref<15x256xf32, #tpu.memory_space<vmem>>, vector<1x256xf32>,
    %c0_30 = arith.constant 0 : index
    %c0_31 = arith.constant 0 : index
    %c0_32 = arith.constant 0 : index
    %c0_33 = arith.constant 0 : index
    %c5 = arith.constant 5 : index
    %15 = vector.load %arg2[%c0_30, %c0_31, %c0_32, %c0_33, %c5] : memref<1x1x1x1x270xf32, #tpu.memory_space<vmem>>, vector<1x1x1x1x256xf32>
    %16 = vector.shape_cast %15 : vector<1x1x1x1x256xf32> to vector<1x256xf32>
    %c5_34 = arith.constant 5 : index
    %c0_35 = arith.constant 0 : index
    %17 = vector.load %arg6[%c5_34, %c0_35] : memref<15x256xf32, #tpu.memory_space<vmem>>, vector<1x256xf32>
    tpu.vector_store %arg6[%c5_34, %c0_35], %16 {strides = array<i32>} : memref<15x256xf32, #tpu.memory_space<vmem>>, vector<1x256xf32>,
    %c0_36 = arith.constant 0 : index
    %c0_37 = arith.constant 0 : index
    %c0_38 = arith.constant 0 : index
    %c0_39 = arith.constant 0 : index
    %c6 = arith.constant 6 : index
    %18 = vector.load %arg2[%c0_36, %c0_37, %c0_38, %c0_39, %c6] : memref<1x1x1x1x270xf32, #tpu.memory_space<vmem>>, vector<1x1x1x1x256xf32>
    %19 = vector.shape_cast %18 : vector<1x1x1x1x256xf32> to vector<1x256xf32>
    %c6_40 = arith.constant 6 : index
    %c0_41 = arith.constant 0 : index
    %20 = vector.load %arg6[%c6_40, %c0_41] : memref<15x256xf32, #tpu.memory_space<vmem>>, vector<1x256xf32>
    tpu.vector_store %arg6[%c6_40, %c0_41], %19 {strides = array<i32>} : memref<15x256xf32, #tpu.memory_space<vmem>>, vector<1x256xf32>,
    %c0_42 = arith.constant 0 : index
    %c0_43 = arith.constant 0 : index
    %c0_44 = arith.constant 0 : index
    %c0_45 = arith.constant 0 : index
    %c7 = arith.constant 7 : index
    %21 = vector.load %arg2[%c0_42, %c0_43, %c0_44, %c0_45, %c7] : memref<1x1x1x1x270xf32, #tpu.memory_space<vmem>>, vector<1x1x1x1x256xf32>
    %22 = vector.shape_cast %21 : vector<1x1x1x1x256xf32> to vector<1x256xf32>
    %c7_46 = arith.constant 7 : index
    %c0_47 = arith.constant 0 : index
    %23 = vector.load %arg6[%c7_46, %c0_47] : memref<15x256xf32, #tpu.memory_space<vmem>>, vector<1x256xf32>
    tpu.vector_store %arg6[%c7_46, %c0_47], %22 {strides = array<i32>} : memref<15x256xf32, #tpu.memory_space<vmem>>, vector<1x256xf32>,
    %c0_48 = arith.constant 0 : index
    %c0_49 = arith.constant 0 : index
    %c0_50 = arith.constant 0 : index
    %c0_51 = arith.constant 0 : index
    %c8 = arith.constant 8 : index
    %24 = vector.load %arg2[%c0_48, %c0_49, %c0_50, %c0_51, %c8] : memref<1x1x1x1x270xf32, #tpu.memory_space<vmem>>, vector<1x1x1x1x256xf32>
    %25 = vector.shape_cast %24 : vector<1x1x1x1x256xf32> to vector<1x256xf32>
    %c8_52 = arith.constant 8 : index
    %c0_53 = arith.constant 0 : index
    %26 = vector.load %arg6[%c8_52, %c0_53] : memref<15x256xf32, #tpu.memory_space<vmem>>, vector<1x256xf32>
    tpu.vector_store %arg6[%c8_52, %c0_53], %25 {strides = array<i32>} : memref<15x256xf32, #tpu.memory_space<vmem>>, vector<1x256xf32>,
    %c0_54 = arith.constant 0 : index
    %c0_55 = arith.constant 0 : index
    %c0_56 = arith.constant 0 : index
    %c0_57 = arith.constant 0 : index
    %c9 = arith.constant 9 : index
    %27 = vector.load %arg2[%c0_54, %c0_55, %c0_56, %c0_57, %c9] : memref<1x1x1x1x270xf32, #tpu.memory_space<vmem>>, vector<1x1x1x1x256xf32>
    %28 = vector.shape_cast %27 : vector<1x1x1x1x256xf32> to vector<1x256xf32>
    %c9_58 = arith.constant 9 : index
    %c0_59 = arith.constant 0 : index
    %29 = vector.load %arg6[%c9_58, %c0_59] : memref<15x256xf32, #tpu.memory_space<vmem>>, vector<1x256xf32>
    tpu.vector_store %arg6[%c9_58, %c0_59], %28 {strides = array<i32>} : memref<15x256xf32, #tpu.memory_space<vmem>>, vector<1x256xf32>,
    %c0_60 = arith.constant 0 : index
    %c0_61 = arith.constant 0 : index
    %c0_62 = arith.constant 0 : index
    %c0_63 = arith.constant 0 : index
    %c10 = arith.constant 10 : index
    %30 = vector.load %arg2[%c0_60, %c0_61, %c0_62, %c0_63, %c10] : memref<1x1x1x1x270xf32, #tpu.memory_space<vmem>>, vector<1x1x1x1x256xf32>
    %31 = vector.shape_cast %30 : vector<1x1x1x1x256xf32> to vector<1x256xf32>
    %c10_64 = arith.constant 10 : index
    %c0_65 = arith.constant 0 : index
    %32 = vector.load %arg6[%c10_64, %c0_65] : memref<15x256xf32, #tpu.memory_space<vmem>>, vector<1x256xf32>
    tpu.vector_store %arg6[%c10_64, %c0_65], %31 {strides = array<i32>} : memref<15x256xf32, #tpu.memory_space<vmem>>, vector<1x256xf32>,
    %c0_66 = arith.constant 0 : index
    %c0_67 = arith.constant 0 : index
    %c0_68 = arith.constant 0 : index
    %c0_69 = arith.constant 0 : index
    %c11 = arith.constant 11 : index
    %33 = vector.load %arg2[%c0_66, %c0_67, %c0_68, %c0_69, %c11] : memref<1x1x1x1x270xf32, #tpu.memory_space<vmem>>, vector<1x1x1x1x256xf32>
    %34 = vector.shape_cast %33 : vector<1x1x1x1x256xf32> to vector<1x256xf32>
    %c11_70 = arith.constant 11 : index
    %c0_71 = arith.constant 0 : index
    %35 = vector.load %arg6[%c11_70, %c0_71] : memref<15x256xf32, #tpu.memory_space<vmem>>, vector<1x256xf32>
    tpu.vector_store %arg6[%c11_70, %c0_71], %34 {strides = array<i32>} : memref<15x256xf32, #tpu.memory_space<vmem>>, vector<1x256xf32>,
    %c0_72 = arith.constant 0 : index
    %c0_73 = arith.constant 0 : index
    %c0_74 = arith.constant 0 : index
    %c0_75 = arith.constant 0 : index
    %c12 = arith.constant 12 : index
    %36 = vector.load %arg2[%c0_72, %c0_73, %c0_74, %c0_75, %c12] : memref<1x1x1x1x270xf32, #tpu.memory_space<vmem>>, vector<1x1x1x1x256xf32>
    %37 = vector.shape_cast %36 : vector<1x1x1x1x256xf32> to vector<1x256xf32>
    %c12_76 = arith.constant 12 : index
    %c0_77 = arith.constant 0 : index
    %38 = vector.load %arg6[%c12_76, %c0_77] : memref<15x256xf32, #tpu.memory_space<vmem>>, vector<1x256xf32>
    tpu.vector_store %arg6[%c12_76, %c0_77], %37 {strides = array<i32>} : memref<15x256xf32, #tpu.memory_space<vmem>>, vector<1x256xf32>,
    %c0_78 = arith.constant 0 : index
    %c0_79 = arith.constant 0 : index
    %c0_80 = arith.constant 0 : index
    %c0_81 = arith.constant 0 : index
    %c13 = arith.constant 13 : index
    %39 = vector.load %arg2[%c0_78, %c0_79, %c0_80, %c0_81, %c13] : memref<1x1x1x1x270xf32, #tpu.memory_space<vmem>>, vector<1x1x1x1x256xf32>
    %40 = vector.shape_cast %39 : vector<1x1x1x1x256xf32> to vector<1x256xf32>
    %c13_82 = arith.constant 13 : index
    %c0_83 = arith.constant 0 : index
    %41 = vector.load %arg6[%c13_82, %c0_83] : memref<15x256xf32, #tpu.memory_space<vmem>>, vector<1x256xf32>
    tpu.vector_store %arg6[%c13_82, %c0_83], %40 {strides = array<i32>} : memref<15x256xf32, #tpu.memory_space<vmem>>, vector<1x256xf32>,
    %c0_84 = arith.constant 0 : index
    %c0_85 = arith.constant 0 : index
    %c0_86 = arith.constant 0 : index
    %c0_87 = arith.constant 0 : index
    %c14 = arith.constant 14 : index
    %42 = vector.load %arg2[%c0_84, %c0_85, %c0_86, %c0_87, %c14] : memref<1x1x1x1x270xf32, #tpu.memory_space<vmem>>, vector<1x1x1x1x256xf32>
    %43 = vector.shape_cast %42 : vector<1x1x1x1x256xf32> to vector<1x256xf32>
    %c14_88 = arith.constant 14 : index
    %c0_89 = arith.constant 0 : index
    %44 = vector.load %arg6[%c14_88, %c0_89] : memref<15x256xf32, #tpu.memory_space<vmem>>, vector<1x256xf32>
    tpu.vector_store %arg6[%c14_88, %c0_89], %43 {strides = array<i32>} : memref<15x256xf32, #tpu.memory_space<vmem>>, vector<1x256xf32>,
    %c0_90 = arith.constant 0 : index
    %c0_91 = arith.constant 0 : index
    %c0_92 = arith.constant 0 : index
    %c0_93 = arith.constant 0 : index
    %45 = vector.load %arg3[%c0_90, %c0_91, %c0_92, %c0_93] : memref<1x1x4x15xf32, #tpu.memory_space<vmem>>, vector<1x1x4x15xf32>
    %46 = vector.shape_cast %45 : vector<1x1x4x15xf32> to vector<4x15xf32>
    %c0_94 = arith.constant 0 : index
    %c0_95 = arith.constant 0 : index
    %47 = vector.load %arg6[%c0_94, %c0_95] : memref<15x256xf32, #tpu.memory_space<vmem>>, vector<15x256xf32>
    %cst = arith.constant dense<0.000000e+00> : vector<4x256xf32>
    %48 = tpu.matmul %46, %47, %cst {dimension_numbers = #tpu.dot_dimension_numbers<[1], [0], [0], [1], [0, 0, 1, 1], [], []>} : vector<4x15xf32>, vector<15x256xf32>, vector<4x256xf32> -> vector<4x256xf32>
    %c0_96 = arith.constant 0 : index
    %c0_97 = arith.constant 0 : index
    %c0_98 = arith.constant 0 : index
    %49 = vector.load %arg4[%c0_96, %c0_97, %c0_98] : memref<1x4x1xf32, #tpu.memory_space<vmem>>, vector<1x4x1xf32>
    %50 = vector.shape_cast %49 : vector<1x4x1xf32> to vector<4x1xf32>
    %51 = vector.broadcast %50 : vector<4x1xf32> to vector<4x256xf32>
    %52 = arith.addf %48, %51 : vector<4x256xf32>
    %cst_99 = arith.constant 0.000000e+00 : f32
    %53 = vector.broadcast %cst_99 : f32 to vector<4x256xf32>
    %54 = arith.cmpf oge, %52, %53 : vector<4x256xf32>
    %cst_100 = arith.constant 2.000000e-01 : f32
    %55 = vector.broadcast %cst_100 : f32 to vector<4x256xf32>
    %56 = arith.mulf %55, %52 : vector<4x256xf32>
    %57 = arith.select %54, %52, %56 : vector<4x256xi1>, vector<4x256xf32>
    %58 = arith.truncf %57 : vector<4x256xf32> to vector<4x256xbf16>
    %c0_101 = arith.constant 0 : index
    %c0_102 = arith.constant 0 : index
    %c0_103 = arith.constant 0 : index
    %c0_104 = arith.constant 0 : index
    %59 = vector.load %arg5[%c0_101, %c0_102, %c0_103, %c0_104] : memref<1x1x4x256xbf16, #tpu.memory_space<vmem>>, vector<1x1x4x256xbf16>
    %60 = vector.shape_cast %59 : vector<1x1x4x256xbf16> to vector<4x256xbf16>
    %61 = vector.shape_cast %58 : vector<4x256xbf16> to vector<1x1x4x256xbf16>
    tpu.vector_store %arg5[%c0_101, %c0_102, %c0_103, %c0_104], %61 {strides = array<i32>} : memref<1x1x4x256xbf16, #tpu.memory_space<vmem>>, vector<1x1x4x256xbf16>,
    return
  }
  func.func @transform_0(%arg0: i32, %arg1: i32) -> (i32, i32, i32, i32, i32) {
    %c0_i32 = arith.constant 0 : i32
    %c0_i32_0 = arith.constant 0 : i32
    %c0_i32_1 = arith.constant 0 : i32
    %c0_i32_2 = arith.constant 0 : i32
    return %arg1, %arg0, %c0_i32, %c0_i32_0, %c0_i32_1 : i32, i32, i32, i32, i32
  }
  func.func @transform_1(%arg0: i32, %arg1: i32) -> (i32, i32, i32, i32) {
    %c0_i32 = arith.constant 0 : i32
    %c0_i32_0 = arith.constant 0 : i32
    %c0_i32_1 = arith.constant 0 : i32
    %c0_i32_2 = arith.constant 0 : i32
    return %c0_i32, %arg0, %c0_i32_0, %c0_i32_1 : i32, i32, i32, i32
  }
  func.func @transform_2(%arg0: i32, %arg1: i32) -> (i32, i32, i32) {
    %c0_i32 = arith.constant 0 : i32
    %c0_i32_0 = arith.constant 0 : i32
    %c0_i32_1 = arith.constant 0 : i32
    return %arg0, %c0_i32, %c0_i32_0 : i32, i32, i32
  }
  func.func @transform_3(%arg0: i32, %arg1: i32) -> (i32, i32, i32, i32) {
    %c0_i32 = arith.constant 0 : i32
    %c0_i32_0 = arith.constant 0 : i32
    %c0_i32_1 = arith.constant 0 : i32
    return %arg1, %arg0, %c0_i32, %c0_i32_0 : i32, i32, i32, i32
  }
}

</mosaic_0001>

<bundles_post_ra>
// kernel: tpu_custom_call.1
= control target key start
LH: loop header
LB: loop body
LE: loop exit
PB: predicated region body
PF: predicated region fallthrough
CT: control target
= control target key end

     0   :  { %8 = vsyncpa [#allocation4], 0  ;;  %s1037_s0 = inlined_call_operand.hbm [shape: f32[2,1,1,1,270], index: 0, kind: input, shape index: {}]   ;;  %s1038_s1 = inlined_call_operand.vmem [shape: f32[1,1,4,15], index: 1, kind: input, shape index: {}]   ;;  %s1039_s2 = inlined_call_operand.vmem [shape: f32[1,4,1], index: 2, kind: input, shape index: {}]   ;;  %s1040_s3 = inlined_call_operand.hbm [shape: bf16[2,1,4,256], index: 3, kind: output, shape index: {}]  }
   0x1   :  { %10 = vsyncpa [#allocation4 + $0x1], 0 }
   0x2   :  { %11 = vsyncpa [#allocation5], 0 }
   0x3   :  { %13 = vsyncpa [#allocation5 + $0x1], 0  ;;  %s859_s12 = smov 0   ;;  %s861_s13 = smov 0  }
   0x4   :  { %s863_s14 = smov 0   ;;  %s865_s15 = smov 0  }
   0x5   :  { %s867_s16 = smov 0   ;;  %s869_s17 = smov 0  }
   0x6 LB: > { %s610_s18 = sadd.s32 4294967295, %s822_s17   ;;  %s611_s19 = sadd.s32 4294967294, %s822_s17   ;;  %s822_s17 = sphi %s869_s17, %s19_s17   ;;  %s818_s16 = sphi %s867_s16, %s1051_s16   ;;  %s814_s15 = sphi %s865_s15, %s1050_s15   ;;  %s810_s14 = sphi %s863_s14, %s1049_s14   ;;  %s806_s13 = sphi %s861_s13, %s1048_s13   ;;  %s802_s12 = sphi %s859_s12, %s1047_s12  }
   0x7   : > { %s28_s20 = sadd.s32 1, %s818_s16  ;;  %s40_s21 = sadd.s32 1, %s810_s14 }
   0x8   : > { %p29_p0 = scmp.ge.s32.totalorder %s28_s20, 2  ;;  %p47_p1 = scmp.ne.s32.totalorder %s810_s14, %s806_s13 }
   0x9   : > { %p48_p2 = scmp.eq.s32.totalorder %s822_s17, 0  ;;  %p53_p3 = scmp.ne.s32.totalorder %s806_s13, %s802_s12 }
   0xa   : > { %s1053_s20 = smov (%p29_p0, %s28_s20), 0  ;;  %p54_p5 = scmp.eq.s32.totalorder %s610_s18, 0 }
   0xb   : > { %p900_p4 = por %p48_p2, %p47_p1  ;;  %s35_s23 = ssub.s32 %s818_s16, %s1053_s20 }
   0xc   : > { %p131_p6 = scmp.eq.s32.totalorder %s610_s18, 1  ;;  %p38_p7 = scmp.eq.s32.totalorder %s35_s23, 0 }
   0xd   : > { %p906_p8 = por %p54_p5, %p53_p3  ;;  %p137_p10 = scmp.eq.s32.totalorder %s611_s19, 1 }
   0xe   : > { %p910_p9 = por %p131_p6, %p47_p1  ;;  %p615_p12 = scmp.ge.s32.totalorder %s822_s17, 2 }
   0xf   : > { %s915_s26 = scalar_select %p38_p7, %s810_s14, %s40_s21  }
  0x10   : > { %p917_p11 = por %p137_p10, %p53_p3  ;;  %p643_p13 = scmp.lt.s32.totalorder %s822_s17, 2 }
  0x11   : > { %s171_s28 = sand.u32 1, %s810_s14   ;;  %s629_s30 = smul.u32 3, %s818_s16 }
  0x12   : > { %s628_s29 = smul.u32 3, %s171_s28  ;;  %p636_p0 = pnand %p643_p13, %p900_p4 }
  0x13   : > { %p616_p2 = scmp.ge.s32.totalorder %s822_s17, 1  ;;  %s181_s6 = scalar_lea.hbm %s1037_s0, %s629_s30 }
  0x14   : > { %s175_s7 = scalar_lea.vmem [#allocation3], %s628_s29  ;;  %s183_s9 = sshll.u32 %s181_s6, 4  ;;  %s184_s9 = int_to_ptr.hbm [resolvable:$true] %s183_s9 }
  0x15   : > { %s185_s8 = sshll.u32 %s175_s7, 4  ;;  %s172_s10 = scalar_lea.sflag [#allocation4], %s171_s28  ;;  %s186_s8 = int_to_ptr.vmem [resolvable:$true] %s185_s8 }
  0x16   : > { %638 = dma.hbm_to_vmem [thread:$0]  (!%p636_p0), %s184_s9, 48, %s186_s8, %s172_s10  }
  0x17   : > { %p190_p1 = scmp.lt.s32.totalorder %s822_s17, 3 }
  0x19   : > { %p191_p3 = pnand %p616_p2, %p190_p1 }
  0x1a   : > { %s933_s11 = sand.u32 (!%p191_p3), 1, %s806_s13  }
  0x1b   : > { %194 = sbr.rel (%p191_p3) target bundleno = 333 (0x14d), region = 32  ;;  %s197_s19 = scalar_lea.sflag (!%p191_p3), [#allocation4], %s933_s11 }
  0x1c   : > { %s630_s18 = smul.u32 (!%p191_p3), 3, %s933_s11 }
  0x1e   : > { %s937_s21 = scalar_lea.vmem (!%p191_p3), [#allocation3], %s630_s18 }
  0x20   : > { %793 = dma.done.wait (%p906_p8), %s197_s19, 48  }
  0x21   : > { %795 = vsyncadd (%p906_p8), %s197_s19, 4294967248  ;;  %v346_v0 = vld [vmem:[%s937_s21] sm:$0x7]  ;;  %s824_s22 = smov 118   ;;  %s825_s23 = smov 120   ;;  %v241_v14 = vlaneseq  ;;  %vm373_vm0 = vcmask 949248  }
  0x22   : > { %v324_v1 = vld [vmem:[%s937_s21] sm:$0x7]  ;;  %348 = vrot.lane.b32.xlu1 %v346_v0, %s824_s22  ;;  %s826_s28 = smov 116   ;;  %s827_s24 = smov 117   ;;  %vm384_vm2 = vcmask 941056   ;;  %vm263_vm3 = vcmask 1031168  }
  0x23   : > { %326 = vrot.lane.b32.xlu0 %v324_v1, %s825_s23  ;;  %v368_v2 = vld [vmem:[%s937_s21] sm:$0x7]  ;;  %s828_s29 = smov 119   ;;  %s829_s30 = smov 115   ;;  %vm957_vm1 = vcmp.lt.s32.totalorder %v241_v14, 256  ;;  %vm351_vm4 = vcmask 965632  }
  0x24   : > { %370 = vrot.lane.b32.xlu2 %v368_v2, %s826_s28  ;;  %v357_v3 = vld [vmem:[%s937_s21] sm:$0x7]  ;;  %s830_s4 = smov 114   ;;  %s831_s5 = smov 127   ;;  %vm329_vm5 = vcmask 982016   ;;  %vm296_vm6 = vcmask 1006592  }
  0x25   : > { %v335_v4 = vld [vmem:[%s937_s21] sm:$0x7]  ;;  %s832_s6 = smov 126   ;;  %s833_s7 = smov 125   ;;  %vm362_vm7 = vcmask 957440   ;;  %vm340_vm8 = vcmask 973824  }
  0x26   : > { %v379_v5 = vld [vmem:[%s937_s21] sm:$0x7]  ;;  %s834_s8 = smov 124   ;;  %s835_s9 = smov 123   ;;  %v838_v42 = vmov 0   ;;  %vm395_vm9 = vcmask 932864  }
  0x27   : > { %v390_v6 = vld [vmem:[%s937_s21] sm:$0x7]  ;;  %s836_s10 = smov 122   ;;  %s837_s18 = smov 121   ;;  %708 = vset.pattern.permute.xlu2 %v838_v42  ;;  %709 = vset.pattern.permute.xlu0 %v838_v42  ;;  %vm252_vm10 = vcmask 1039360   ;;  %vm274_vm11 = vcmask 1022976  }
  0x28   : > { %v247_v7 = vld [vmem:[%s937_s21] sm:$0x7]  ;;  %vm285_vm12 = vcmask 1014784   ;;  %vm416_vm13 = vcmask 1046528   ;;  %vm307_vm14 = vcmask 998400   ;;  %vm318_vm15 = vcmask 990208  }
  0x29   : > { %v258_v8 = vld [vmem:[%s937_s21] sm:$0x7]  ;;  %s617_s28 = sshll.u32 %s933_s11, 2  ;;  %s760_s19 = scalar_lea.hbm %s1040_s3, 8 }
  0x2a   : > { %359 = vrot.lane.b32.xlu1 %v357_v3, %s827_s24  ;;  %v269_v9 = vld [vmem:[%s937_s21] sm:$0x7]  ;;  %s627_s24 = sshll.u32 %s814_s15, 2  ;;  %s479_s15 = scalar_lea.sflag [#allocation5], %s933_s11 }
  0x2b   : > { %337 = vrot.lane.b32.xlu0 %v335_v4, %s828_s29  ;;  %v280_v10 = vld [vmem:[%s937_s21] sm:$0x7] }
  0x2c   : > { %381 = vrot.lane.b32.xlu2 %v379_v5, %s829_s30  ;;  %v291_v11 = vld [vmem:[%s937_s21] sm:$0x7] }
  0x2d   : > { %v302_v12 = vld [vmem:[%s937_s21] sm:$0x7] }
  0x2e   : > { %v313_v13 = vld [vmem:[%s937_s21] sm:$0x7] }
  0x2f   : > { %v240_v33 = vld [vmem:[%s937_s21] sm:$0x3] }
  0x30   : > { %245 = vst.msk [vmem:[#allocation2] ss:$8 sm:$0x3] %vm957_vm1, %v240_v33  ;;  %v406_v41 = vld [vmem:[%s1039_s2] sm:$0xf] }
  0x31   : > { %v401_v63 = vld [vmem:[%s1038_s1] sm:$0xf] }
  0x32   : > { %249 = vrot.lane.b32.xlu1 %v247_v7, %s831_s5  ;;  %s231_s5 = scalar_lea.vmem [#allocation6], %s617_s28 }
  0x33   : > { %392 = vrot.lane.b32.xlu0 %v390_v6, %s830_s4  ;;  %s492_s4 = scalar_lea.hbm %s1040_s3, %s627_s24 }
  0x34   : > { %260 = vrot.lane.b32.xlu2 %v258_v8, %s832_s6  ;;  %s494_s6 = sshll.u32 %s231_s5, 4  ;;  %s495_s6 = int_to_ptr.vmem [resolvable:$true] %s494_s6 }
  0x3a   : > { %282 = vrot.lane.b32.xlu1 %v280_v10, %s834_s8 }
  0x3b   : > { %271 = vrot.lane.b32.xlu0 %v269_v9, %s833_s7  ;;  %s496_s7 = sshll.u32 %s492_s4, 4  ;;  %s497_s7 = int_to_ptr.hbm [resolvable:$true] %s496_s7 }
  0x3c   : > { %293 = vrot.lane.b32.xlu2 %v291_v11, %s835_s9  ;;  %s754_s8 = sshra.s32 %s497_s7, 4  ;;  %s755_s8 = int_to_ptr.hbm [resolvable:$true] %s754_s8 }
  0x3d   : > { %s756_s9 = scalar_lea.hbm %s755_s8, 4  ;;  %p761_p7 = scmp.lt.s32.totalorder %s755_s8, %s1040_s3 }
  0x3e   : > { %p757_p4 = scmp.ne.s32.totalorder %s755_s8, %s756_s9  ;;  %p762_p8 = scmp.lt.s32.totalorder %s760_s19, %s756_s9 }
  0x40   : > { %p758_p5 = pnand %p757_p4, %p910_p9  ;;  %p763_p10 = por %p762_p8, %p761_p7 }
  0x42   : > { %315 = vrot.lane.b32.xlu1 %v313_v13, %s837_s18  ;;  %p759_p6 = pneg %p758_p5 }
  0x43   : > { %304 = vrot.lane.b32.xlu0 %v302_v12, %s836_s10 }
  0x44   : > { %409 = vperm.xlu2 %708, %v406_v41   ;;  %p764_p13 = pnand %p763_p10, %p759_p6 }
  0x7e   : > { %v371_v15 = vpop.permute.xlu2 %370 }
  0x7f   : > { %v372_v16 = vrot.slane %v371_v15, 1 }
  0x81   : > { %v374_v18 = vsel %vm373_vm0, %v371_v15, %v372_v16  ;;  %vm412_vm0 = vcmask 121856  }
  0x82   : > { %377 = vst.msk [vmem:[#allocation2 + $0x14] ss:$8 sm:$0x3] %vm957_vm1, %v374_v18 }
  0x86   : > { %v382_v19 = vpop.permute.xlu2 %381 }
  0x87   : > { %v383_v20 = vrot.slane %v382_v19, 1 }
  0x89   : > { %v385_v21 = vsel %vm384_vm2, %v382_v19, %v383_v20 }
  0x8a   : > { %388 = vst.msk [vmem:[#allocation2 + $0x15] ss:$8 sm:$0x3] %vm957_vm1, %v385_v21 }
  0x8e   : > { %v261_v22 = vpop.permute.xlu2 %260 }
  0x8f   : > { %v262_v23 = vrot.slane %v261_v22, 1 }
  0x91   : > { %v264_v24 = vsel %vm263_vm3, %v261_v22, %v262_v23  ;;  %vm472_vm3 = vcmask 1041408  }
  0x92   : > { %267 = vst.msk [vmem:[#allocation2 + $0x2] ss:$8 sm:$0x3] %vm957_vm1, %v264_v24 }
  0x94   : > { %v349_v25 = vpop.permute.xlu1 %348 }
  0x95   : > { %v327_v26 = vpop.permute.xlu0 %326  ;;  %v350_v27 = vrot.slane %v349_v25, 1 }
  0x96   : > { %v328_v28 = vrot.slane %v327_v26, 1  ;;  %v294_v31 = vpop.permute.xlu2 %293 }
  0x97   : > { %v352_v29 = vsel %vm351_vm4, %v349_v25, %v350_v27  ;;  %v295_v32 = vrot.slane %v294_v31, 1 }
  0x98   : > { %v330_v30 = vsel %vm329_vm5, %v327_v26, %v328_v28  ;;  %355 = vst.msk [vmem:[#allocation2 + $0x12] ss:$8 sm:$0x3] %vm957_vm1, %v352_v29 }
  0x99   : > { %333 = vst.msk [vmem:[#allocation2 + $0x10] ss:$8 sm:$0x3] %vm957_vm1, %v330_v30  ;;  %v297_v34 = vsel %vm296_vm6, %v294_v31, %v295_v32 }
  0x9a   : > { %300 = vst.msk [vmem:[#allocation2 + $0x5] ss:$8 sm:$0x3] %vm957_vm1, %v297_v34 }
  0x9c   : > { %v360_v35 = vpop.permute.xlu1 %359 }
  0x9d   : > { %v338_v36 = vpop.permute.xlu0 %337  ;;  %v361_v37 = vrot.slane %v360_v35, 1 }
  0x9e   : > { %v339_v38 = vrot.slane %v338_v36, 1  ;;  %v410_v2 = vpop.permute.xlu2 %409 }
  0x9f   : > { %v363_v39 = vsel %vm362_vm7, %v360_v35, %v361_v37 }
  0xa0   : > { %v341_v40 = vsel %vm340_vm8, %v338_v36, %v339_v38  ;;  %366 = vst.msk [vmem:[#allocation2 + $0x13] ss:$8 sm:$0x3] %vm957_vm1, %v363_v39 }
  0xa1   : > { %344 = vst.msk [vmem:[#allocation2 + $0x11] ss:$8 sm:$0x3] %vm957_vm1, %v341_v40 }
  0xa4   : > { %v250_v44 = vpop.permute.xlu1 %249 }
  0xa5   : > { %v393_v43 = vpop.permute.xlu0 %392  ;;  %v251_v46 = vrot.slane %v250_v44, 1 }
  0xa6   : > { %v394_v45 = vrot.slane %v393_v43, 1 }
  0xa7   : > { %v253_v48 = vsel %vm252_vm10, %v250_v44, %v251_v46 }
  0xa8   : > { %v396_v47 = vsel %vm395_vm9, %v393_v43, %v394_v45  ;;  %256 = vst.msk [vmem:[#allocation2 + $0x1] ss:$8 sm:$0x3] %vm957_vm1, %v253_v48 }
  0xa9   : > { %399 = vst.msk [vmem:[#allocation2 + $0x16] ss:$8 sm:$0x3] %vm957_vm1, %v396_v47 }
  0xac   : > { %v283_v50 = vpop.permute.xlu1 %282 }
  0xad   : > { %v272_v49 = vpop.permute.xlu0 %271  ;;  %v284_v52 = vrot.slane %v283_v50, 1 }
  0xae   : > { %v273_v51 = vrot.slane %v272_v49, 1 }
  0xaf   : > { %v286_v54 = vsel %vm285_vm12, %v283_v50, %v284_v52 }
  0xb0   : > { %v275_v53 = vsel %vm274_vm11, %v272_v49, %v273_v51  ;;  %v404_v55 = vld [vmem:[#allocation2 + $0x10] sm:$0x7f]  ;;  %v405_v56 = vld [vmem:[#allocation2 + $0x18] sm:$0x7f] }
  0xb1   : > { %278 = vst.msk [vmem:[#allocation2 + $0x3] ss:$8 sm:$0x3] %vm957_vm1, %v275_v53  ;;  %618 = vmatpush.msk.msra.mxu0 %vm416_vm13, %v404_v55  ;;  %620 = vmatpush.msk.msra.mxu1 %vm416_vm13, %v405_v56 }
  0xb2   : > { %289 = vst.msk [vmem:[#allocation2 + $0x4] ss:$8 sm:$0x3] %vm957_vm1, %v286_v54 }
  0xb4   : > { %v316_v58 = vpop.permute.xlu1 %315 }
  0xb5   : > { %v305_v57 = vpop.permute.xlu0 %304  ;;  %v317_v60 = vrot.slane %v316_v58, 1 }
  0xb6   : > { %v306_v59 = vrot.slane %v305_v57, 1 }
  0xb7   : > { %v319_v62 = vsel %vm318_vm15, %v316_v58, %v317_v60 }
  0xb8   : > { %v308_v61 = vsel %vm307_vm14, %v305_v57, %v306_v59  ;;  %322 = vst.msk [vmem:[#allocation2 + $0x7] ss:$8 sm:$0x3] %vm957_vm1, %v319_v62 }
  0xb9   : > { %311 = vst.msk [vmem:[#allocation2 + $0x6] ss:$8 sm:$0x3] %vm957_vm1, %v308_v61 }
  0xc0   : > { %v402_v0 = vld [vmem:[#allocation2] sm:$0xff]  ;;  %v403_v1 = vld [vmem:[#allocation2 + $0x8] sm:$0xff] }
  0xc1   : > { %438 = vmatpush.msra.mxu0 %v402_v0  ;;  %458 = vmatpush.msra.mxu1 %v403_v1 }
  0xc2   : > { %619 = vmatmul.msk.f32.vlgmr.msra.gmra.mxu0 %vm412_vm0, %v401_v63  ;;  %621 = vmatmul.msk.f32.vlgmr.msra.gmra.mxu1 %vm412_vm0, %v401_v63 }
 0x13f   : > { %v440_v3 = vpop.f32.mrf.mxu0  ;;  %v460_v4 = vpop.f32.mrf.mxu1 }
 0x140   : > { %v441_v5 = vadd.f32 %v440_v3, %v410_v2  ;;  %v461_v6 = vadd.f32 %v460_v4, %v410_v2 }
 0x142   : > { %vm463_vm2 = vcmp.ge.f32.partialorder %v441_v5, 0.0  ;;  %v465_v7 = vmul.f32 0.2, %v441_v5  ;;  %vm464_vm1 = vcmp.ge.f32.partialorder %v461_v6, 0.0  ;;  %v466_v8 = vmul.f32 0.2, %v461_v6 }
 0x144   : > { %v467_v9 = vsel %vm463_vm2, %v441_v5, %v465_v7  ;;  %v468_v10 = vsel %vm464_vm1, %v461_v6, %v466_v8 }
 0x145   : > { %v469_v11 = vpack.c.bf16 %v468_v10, %v467_v9 }
 0x147   : > { %v471_v12 = vrot.slane %v469_v11, 2 }
 0x149   : > { %v475_v13 = vsel %vm472_vm3, %v469_v11, %v471_v12 }
 0x14a   : > { %477 = vst [vmem:[%s231_s5] sm:$0xf] %v475_v13 }
 0x14b   : > { %767 = shalt.err (!%p764_p13)
}
 0x14c   : > { %633 = dma.vmem_to_hbm [thread:$0]  (%p910_p9), %s495_s6, 64, %s497_s7, %s479_s15  }
 0x14d PF: > { %s508_s11 = sand.u32 1, %s802_s12   ;;  %p640_p0 = pnand %p615_p12, %p917_p11 }
 0x14e   : > { %s509_s23 = scalar_lea.sflag [#allocation5], %s508_s11 }
 0x14f   : > { %p641_p2 = pneg %p640_p0 }
 0x151   : > { %797 = dma.done.wait (%p641_p2), %s509_s23, 64  }
 0x152   : > { %799 = vsyncadd (%p641_p2), %s509_s23, 4294967232  ;;  %s19_s17 = sadd.s32 1, %s822_s17   ;;  %s1047_s12 = smov %s806_s13 }
 0x153   : > { %p16_p1 = scmp.ge.s32.totalorder %s19_s17, 4   ;;  %s1048_s13 = smov %s810_s14 }
 0x154   : > { %s1049_s14 = smov %s915_s26  ;;  %s1050_s15 = smov %s818_s16 }
 0x155   : > { %s1051_s16 = smov %s1053_s20  ;;  %18 = sbr.rel (!%p16_p1) target bundleno = 6 (0x6), region = 97 }
 0x15a   :  { %515 = vsyncpa [#allocation4], 1 }
 0x15b   :  { %517 = vsyncpa [#allocation4 + $0x1], 1 }
 0x15c   :  { %518 = vsyncpa [#allocation5], 1 }
 0x15d   :  { %520 = vsyncpa [#allocation5 + $0x1], 1 }

</bundles_post_ra>
